<compile_context>
chip_gen: v5e
topology: v5e:2x2
jax: 0.10.0
libtpu: 0.0.40
codegen_flags: <defaults>
</compile_context>

<pallas_src>
import functools

import jax
import jax.numpy as jnp
from jax.experimental import pallas as pl
from jax.experimental.pallas import tpu as pltpu


def conv_block_kernel(x_ref, w1_ref, b1_ref, w2_ref, b2_ref,
                      top_ref, bot_ref, o_ref, *, slope):
    """One batch block: (B*H, W*Cin) bf16 rows -> (B*H, W*Cout) f32 rows.

    x_ref:   (BH, W*Cin)      bf16, B images stacked along the sublane axis
    w*_ref:  (3, K, W*Cout)   bf16 banded weights, one matrix per kernel row kh
    b*_ref:  (1, W*Cout)      f32 bias tiled along W
    top_ref: (BH, 1)          f32 mask, 0 on the first row of every image
    bot_ref: (BH, 1)          f32 mask, 0 on the last  row of every image
    o_ref:   (BH, W*Cout)     f32 lane-dense output block
    """
    bh = x_ref.shape[0]
    not_top = top_ref[...]          # kh=0 tap invalid on the first row of an image
    not_bot = bot_ref[...]          # kh=2 tap invalid on the last  row of an image

    def conv3x3(lhs, w_ref, b_ref):
        # Three fully aligned full-slab MXU matmuls (one per kernel row kh).
        # kw taps + SAME padding along W live inside the banded weights; the
        # kh = 0 / 2 taps are realised by rotating the f32 results by one
        # sublane (XLU) and masking per-image boundary rows (one VPU mul each).
        y_up = jnp.dot(lhs, w_ref[0], preferred_element_type=jnp.float32)
        y_mid = jnp.dot(lhs, w_ref[1], preferred_element_type=jnp.float32)
        y_dn = jnp.dot(lhs, w_ref[2], preferred_element_type=jnp.float32)
        acc = y_mid + b_ref[...]                              # init with bias
        # output row r needs input row r-1 (w[kh=0]) and r+1 (w[kh=2]):
        acc = acc + pltpu.roll(y_up, shift=1, axis=0) * not_top
        acc = acc + pltpu.roll(y_dn, shift=bh - 1, axis=0) * not_bot
        return jnp.maximum(acc, slope * acc)                  # LeakyReLU, f32

    y = conv3x3(x_ref[...], w1_ref, b1_ref)                   # (BH, W*Cout) f32
    z = conv3x3(y.astype(jnp.bfloat16), w2_ref, b2_ref)       # single bf16 cast of y
    o_ref[...] = z.astype(o_ref.dtype)


def _banded_conv_weights(w_hwio, width):
    """(3, 3, Cin, Cout) HWIO -> (3, width*Cin, width*Cout) block-banded.

    B[kh][(w + kw - 1)*Cin + ci, w*Cout + co] = w_hwio[kh, kw, ci, co];
    out-of-range kw taps at the left/right image border are dropped, which
    implements the SAME zero-padding along W inside the weights.
    """
    _, _, cin, cout = w_hwio.shape
    mats = []
    for kh in range(3):
        m = jnp.zeros((width * cin, width * cout), jnp.float32)
        for kw in range(3):
            # shift[w', w] = 1  iff  w' = w + kw - 1 (input col feeding output col)
            shift = jnp.eye(width, k=1 - kw, dtype=jnp.float32)
            m = m + jnp.kron(shift, w_hwio[kh, kw].astype(jnp.float32))
        mats.append(m)
    return jnp.stack(mats)


def _pick_block_b(n, h):
    """Images per grid step.

    Targets ~256 MXU rows per matmul (M = B*H) but, when the batch allows it,
    keeps at least two grid steps so both v7x TensorCores get work under
    dimension_semantics=("parallel",).  On single-TC v5e/v6e the extra grid
    step only costs ~0.35 us of pipeline overhead.
    """
    target = max(1, 256 // max(h, 1))
    best = 1
    for d in range(1, n + 1):
        if n % d == 0 and d <= target:
            best = d
    if best == n and n >= 2:
        for d in range(best - 1, 0, -1):
            if n % d == 0:
                best = d
                break
    return best


def conv_block(x_nchw, w1, b1, w2, b2, slope=0.2):
    """Pallas ConvBlock forward. x_nchw: (N, Cin, H, W); w1/w2 in HWIO layout."""
    x = jnp.transpose(x_nchw, (0, 2, 3, 1))                   # NCHW -> NHWC
    N, H, W, Cin = x.shape
    Cout = w1.shape[-1]

    B = _pick_block_b(N, H)                                   # images per grid step
    G = N // B
    BH = B * H

    # Lane-dense flat layout: every image row is one (W*C) slab.  bf16 halves
    # the input DMA and removes all in-kernel LHS casts.
    x2d = x.reshape(N * H, W * Cin).astype(jnp.bfloat16)

    # Banded weights (kw taps + W padding folded into K) and W-tiled biases,
    # built once on the XLA side.  Weights ship to VMEM as bf16.
    w1b = _banded_conv_weights(w1, W).astype(jnp.bfloat16)    # (3, W*Cin,  W*Cout)
    w2b = _banded_conv_weights(w2, W).astype(jnp.bfloat16)    # (3, W*Cout, W*Cout)
    b1t = jnp.tile(b1.astype(jnp.float32), W).reshape(1, W * Cout)
    b2t = jnp.tile(b2.astype(jnp.float32), W).reshape(1, W * Cout)

    # Grid-invariant per-image boundary masks for the kh = 0 / 2 taps.
    h_idx = jnp.arange(BH, dtype=jnp.int32) % H
    not_top = (h_idx != 0).astype(jnp.float32).reshape(BH, 1)
    not_bot = (h_idx != H - 1).astype(jnp.float32).reshape(BH, 1)

    out2d = pl.pallas_call(
        functools.partial(conv_block_kernel, slope=slope),
        out_shape=jax.ShapeDtypeStruct((N * H, W * Cout), x_nchw.dtype),
        grid_spec=pltpu.PrefetchScalarGridSpec(
            num_scalar_prefetch=0,
            grid=(G,),
            in_specs=[
                pl.BlockSpec((BH, W * Cin), lambda g: (g, 0)),
                # Grid-invariant weights/biases/masks (constant index maps).
                # For very large W*C on v7x, single-buffer these
                # (pipeline_mode=pl.Buffered(1)) or switch to im2col weights.
                pl.BlockSpec((3, W * Cin, W * Cout), lambda g: (0, 0, 0)),
                pl.BlockSpec((1, W * Cout), lambda g: (0, 0)),
                pl.BlockSpec((3, W * Cout, W * Cout), lambda g: (0, 0, 0)),
                pl.BlockSpec((1, W * Cout), lambda g: (0, 0)),
                pl.BlockSpec((BH, 1), lambda g: (0, 0)),
                pl.BlockSpec((BH, 1), lambda g: (0, 0)),
            ],
            out_specs=pl.BlockSpec((BH, W * Cout), lambda g: (g, 0)),
        ),
        compiler_params=pltpu.CompilerParams(
            dimension_semantics=("parallel",)),
    )(x2d, w1b, b1t, w2b, b2t, not_top, not_bot)

    out = out2d.reshape(N, H, W, Cout)
    return jnp.transpose(out, (0, 3, 1, 2))                   # NHWC -> NCHW


def conv_block_ref(x_nchw, w1, b1, w2, b2, slope=0.2):
    """Pure-JAX f32 reference (XLA conv) for correctness check."""
    x = jnp.transpose(x_nchw, (0, 2, 3, 1))
    dn = ('NHWC', 'HWIO', 'NHWC')
    y = jax.lax.conv_general_dilated(x, w1, (1, 1), 'SAME',
                                     dimension_numbers=dn) + b1
    y = jnp.where(y > 0, y, slope * y)
    y = jax.lax.conv_general_dilated(y, w2, (1, 1), 'SAME',
                                     dimension_numbers=dn) + b2
    y = jnp.where(y > 0, y, slope * y)
    return jnp.transpose(y, (0, 3, 1, 2))


if __name__ == "__main__":
    key = jax.random.PRNGKey(0)
    k_x, k_w1, k_b1, k_w2, k_b2 = jax.random.split(key, 5)

    N, Cin, Cout, H, W = 2, 4, 8, 16, 16
    slope = 0.2

    # Deterministic synthetic parameters (HWIO layout).
    x = jax.random.normal(k_x, (N, Cin, H, W), dtype=jnp.float32)
    w1 = 0.1 * jax.random.normal(k_w1, (3, 3, Cin, Cout), dtype=jnp.float32)
    b1 = 0.05 * jax.random.normal(k_b1, (Cout,), dtype=jnp.float32)
    w2 = 0.1 * jax.random.normal(k_w2, (3, 3, Cout, Cout), dtype=jnp.float32)
    b2 = 0.05 * jax.random.normal(k_b2, (Cout,), dtype=jnp.float32)

    out = conv_block(x, w1, b1, w2, b2, slope=slope)
    out = jax.block_until_ready(out)

    ref = conv_block_ref(x, w1, b1, w2, b2, slope=slope)
    assert out.shape == (N, Cout, H, W)
    # bf16 MXU operands (with f32 accumulation) vs. the all-f32 XLA reference
    # -> relaxed tolerance (intentional).
    err = float(jnp.max(jnp.abs(out - ref)))
    assert jnp.allclose(out, ref, atol=5e-2, rtol=5e-2), err

    print("KERNEL_OK")
</pallas_src>

<mosaic_0001>
module attributes {stable_mosaic.version = 11 : i64} {
  func.func @conv_block_kernel(%arg0: i32, %arg1: memref<16x64xbf16, #tpu.memory_space<vmem>>, %arg2: memref<3x64x128xbf16, #tpu.memory_space<vmem>>, %arg3: memref<1x128xf32, #tpu.memory_space<vmem>>, %arg4: memref<3x128x128xbf16, #tpu.memory_space<vmem>>, %arg5: memref<1x128xf32, #tpu.memory_space<vmem>>, %arg6: memref<16x1xf32, #tpu.memory_space<vmem>>, %arg7: memref<16x1xf32, #tpu.memory_space<vmem>>, %arg8: memref<16x128xf32, #tpu.memory_space<vmem>>) attributes {dimension_semantics = [#tpu.dimension_semantics<parallel>], iteration_bounds = array<i64: 2>, scalar_prefetch = 0 : i64, scratch_operands = 0 : i64, tpu.core_type = #tpu.core_type<tc>, window_params = [{transform_indices = @transform_0, window_bounds = array<i64: 16, 64>}, {pipeline_mode = #tpu.pipeline_mode<synchronous>, transform_indices = @transform_1, window_bounds = array<i64: 3, 64, 128>}, {pipeline_mode = #tpu.pipeline_mode<synchronous>, transform_indices = @transform_2, window_bounds = array<i64: 1, 128>}, {pipeline_mode = #tpu.pipeline_mode<synchronous>, transform_indices = @transform_3, window_bounds = array<i64: 3, 128, 128>}, {pipeline_mode = #tpu.pipeline_mode<synchronous>, transform_indices = @transform_4, window_bounds = array<i64: 1, 128>}, {pipeline_mode = #tpu.pipeline_mode<synchronous>, transform_indices = @transform_5, window_bounds = array<i64: 16, 1>}, {pipeline_mode = #tpu.pipeline_mode<synchronous>, transform_indices = @transform_6, window_bounds = array<i64: 16, 1>}, {transform_indices = @transform_7, window_bounds = array<i64: 16, 128>}]} {
    %c0 = arith.constant 0 : index
    %c0_0 = arith.constant 0 : index
    %0 = vector.load %arg6[%c0, %c0_0] : memref<16x1xf32, #tpu.memory_space<vmem>>, vector<16x1xf32>
    %c0_1 = arith.constant 0 : index
    %c0_2 = arith.constant 0 : index
    %1 = vector.load %arg7[%c0_1, %c0_2] : memref<16x1xf32, #tpu.memory_space<vmem>>, vector<16x1xf32>
    %c0_3 = arith.constant 0 : index
    %c0_4 = arith.constant 0 : index
    %2 = vector.load %arg1[%c0_3, %c0_4] : memref<16x64xbf16, #tpu.memory_space<vmem>>, vector<16x64xbf16>
    %c0_5 = arith.constant 0 : index
    %c0_6 = arith.constant 0 : index
    %c0_7 = arith.constant 0 : index
    %3 = vector.load %arg2[%c0_5, %c0_6, %c0_7] : memref<3x64x128xbf16, #tpu.memory_space<vmem>>, vector<1x64x128xbf16>
    %4 = vector.shape_cast %3 : vector<1x64x128xbf16> to vector<64x128xbf16>
    %cst = arith.constant dense<0.000000e+00> : vector<16x128xf32>
    %5 = tpu.matmul %2, %4, %cst {dimension_numbers = #tpu.dot_dimension_numbers<[1], [0], [0], [1], [0, 0, 1, 1], [], []>} : vector<16x64xbf16>, vector<64x128xbf16>, vector<16x128xf32> -> vector<16x128xf32>
    %c1 = arith.constant 1 : index
    %c0_8 = arith.constant 0 : index
    %c0_9 = arith.constant 0 : index
    %6 = vector.load %arg2[%c1, %c0_8, %c0_9] : memref<3x64x128xbf16, #tpu.memory_space<vmem>>, vector<1x64x128xbf16>
    %7 = vector.shape_cast %6 : vector<1x64x128xbf16> to vector<64x128xbf16>
    %cst_10 = arith.constant dense<0.000000e+00> : vector<16x128xf32>
    %8 = tpu.matmul %2, %7, %cst_10 {dimension_numbers = #tpu.dot_dimension_numbers<[1], [0], [0], [1], [0, 0, 1, 1], [], []>} : vector<16x64xbf16>, vector<64x128xbf16>, vector<16x128xf32> -> vector<16x128xf32>
    %c2 = arith.constant 2 : index
    %c0_11 = arith.constant 0 : index
    %c0_12 = arith.constant 0 : index
    %9 = vector.load %arg2[%c2, %c0_11, %c0_12] : memref<3x64x128xbf16, #tpu.memory_space<vmem>>, vector<1x64x128xbf16>
    %10 = vector.shape_cast %9 : vector<1x64x128xbf16> to vector<64x128xbf16>
    %cst_13 = arith.constant dense<0.000000e+00> : vector<16x128xf32>
    %11 = tpu.matmul %2, %10, %cst_13 {dimension_numbers = #tpu.dot_dimension_numbers<[1], [0], [0], [1], [0, 0, 1, 1], [], []>} : vector<16x64xbf16>, vector<64x128xbf16>, vector<16x128xf32> -> vector<16x128xf32>
    %c0_14 = arith.constant 0 : index
    %c0_15 = arith.constant 0 : index
    %12 = vector.load %arg3[%c0_14, %c0_15] : memref<1x128xf32, #tpu.memory_space<vmem>>, vector<1x128xf32>
    %13 = vector.broadcast %12 : vector<1x128xf32> to vector<16x128xf32>
    %14 = arith.addf %8, %13 : vector<16x128xf32>
    %c1_i32 = arith.constant 1 : i32
    %15 = tpu.dynamic_rotate %5 by %c1_i32 dim 0 : vector<16x128xf32>, i32 -> vector<16x128xf32>
    %16 = vector.broadcast %0 : vector<16x1xf32> to vector<16x128xf32>
    %17 = arith.mulf %15, %16 : vector<16x128xf32>
    %18 = arith.addf %14, %17 : vector<16x128xf32>
    %c15_i32 = arith.constant 15 : i32
    %19 = tpu.dynamic_rotate %11 by %c15_i32 dim 0 : vector<16x128xf32>, i32 -> vector<16x128xf32>
    %20 = vector.broadcast %1 : vector<16x1xf32> to vector<16x128xf32>
    %21 = arith.mulf %19, %20 : vector<16x128xf32>
    %22 = arith.addf %18, %21 : vector<16x128xf32>
    %cst_16 = arith.constant 2.000000e-01 : f32
    %23 = vector.broadcast %cst_16 : f32 to vector<16x128xf32>
    %24 = arith.mulf %23, %22 : vector<16x128xf32>
    %25 = arith.maximumf %22, %24 : vector<16x128xf32>
    %26 = arith.truncf %25 : vector<16x128xf32> to vector<16x128xbf16>
    %c0_17 = arith.constant 0 : index
    %c0_18 = arith.constant 0 : index
    %c0_19 = arith.constant 0 : index
    %27 = vector.load %arg4[%c0_17, %c0_18, %c0_19] : memref<3x128x128xbf16, #tpu.memory_space<vmem>>, vector<1x128x128xbf16>
    %28 = vector.shape_cast %27 : vector<1x128x128xbf16> to vector<128x128xbf16>
    %cst_20 = arith.constant dense<0.000000e+00> : vector<16x128xf32>
    %29 = tpu.matmul %26, %28, %cst_20 {dimension_numbers = #tpu.dot_dimension_numbers<[1], [0], [0], [1], [0, 0, 1, 1], [], []>} : vector<16x128xbf16>, vector<128x128xbf16>, vector<16x128xf32> -> vector<16x128xf32>
    %c1_21 = arith.constant 1 : index
    %c0_22 = arith.constant 0 : index
    %c0_23 = arith.constant 0 : index
    %30 = vector.load %arg4[%c1_21, %c0_22, %c0_23] : memref<3x128x128xbf16, #tpu.memory_space<vmem>>, vector<1x128x128xbf16>
    %31 = vector.shape_cast %30 : vector<1x128x128xbf16> to vector<128x128xbf16>
    %cst_24 = arith.constant dense<0.000000e+00> : vector<16x128xf32>
    %32 = tpu.matmul %26, %31, %cst_24 {dimension_numbers = #tpu.dot_dimension_numbers<[1], [0], [0], [1], [0, 0, 1, 1], [], []>} : vector<16x128xbf16>, vector<128x128xbf16>, vector<16x128xf32> -> vector<16x128xf32>
    %c2_25 = arith.constant 2 : index
    %c0_26 = arith.constant 0 : index
    %c0_27 = arith.constant 0 : index
    %33 = vector.load %arg4[%c2_25, %c0_26, %c0_27] : memref<3x128x128xbf16, #tpu.memory_space<vmem>>, vector<1x128x128xbf16>
    %34 = vector.shape_cast %33 : vector<1x128x128xbf16> to vector<128x128xbf16>
    %cst_28 = arith.constant dense<0.000000e+00> : vector<16x128xf32>
    %35 = tpu.matmul %26, %34, %cst_28 {dimension_numbers = #tpu.dot_dimension_numbers<[1], [0], [0], [1], [0, 0, 1, 1], [], []>} : vector<16x128xbf16>, vector<128x128xbf16>, vector<16x128xf32> -> vector<16x128xf32>
    %c0_29 = arith.constant 0 : index
    %c0_30 = arith.constant 0 : index
    %36 = vector.load %arg5[%c0_29, %c0_30] : memref<1x128xf32, #tpu.memory_space<vmem>>, vector<1x128xf32>
    %37 = vector.broadcast %36 : vector<1x128xf32> to vector<16x128xf32>
    %38 = arith.addf %32, %37 : vector<16x128xf32>
    %c1_i32_31 = arith.constant 1 : i32
    %39 = tpu.dynamic_rotate %29 by %c1_i32_31 dim 0 : vector<16x128xf32>, i32 -> vector<16x128xf32>
    %40 = vector.broadcast %0 : vector<16x1xf32> to vector<16x128xf32>
    %41 = arith.mulf %39, %40 : vector<16x128xf32>
    %42 = arith.addf %38, %41 : vector<16x128xf32>
    %c15_i32_32 = arith.constant 15 : i32
    %43 = tpu.dynamic_rotate %35 by %c15_i32_32 dim 0 : vector<16x128xf32>, i32 -> vector<16x128xf32>
    %44 = vector.broadcast %1 : vector<16x1xf32> to vector<16x128xf32>
    %45 = arith.mulf %43, %44 : vector<16x128xf32>
    %46 = arith.addf %42, %45 : vector<16x128xf32>
    %cst_33 = arith.constant 2.000000e-01 : f32
    %47 = vector.broadcast %cst_33 : f32 to vector<16x128xf32>
    %48 = arith.mulf %47, %46 : vector<16x128xf32>
    %49 = arith.maximumf %46, %48 : vector<16x128xf32>
    %c0_34 = arith.constant 0 : index
    %c0_35 = arith.constant 0 : index
    %50 = vector.load %arg8[%c0_34, %c0_35] : memref<16x128xf32, #tpu.memory_space<vmem>>, vector<16x128xf32>
    tpu.vector_store %arg8[%c0_34, %c0_35], %49 {strides = array<i32>} : memref<16x128xf32, #tpu.memory_space<vmem>>, vector<16x128xf32>,
    return
  }
  func.func @transform_0(%arg0: i32) -> (i32, i32) {
    %c0_i32 = arith.constant 0 : i32
    %c0_i32_0 = arith.constant 0 : i32
    return %arg0, %c0_i32 : i32, i32
  }
  func.func @transform_1(%arg0: i32) -> (i32, i32, i32) {
    %c0_i32 = arith.constant 0 : i32
    %c0_i32_0 = arith.constant 0 : i32
    %c0_i32_1 = arith.constant 0 : i32
    %c0_i32_2 = arith.constant 0 : i32
    return %c0_i32, %c0_i32_0, %c0_i32_1 : i32, i32, i32
  }
  func.func @transform_2(%arg0: i32) -> (i32, i32) {
    %c0_i32 = arith.constant 0 : i32
    %c0_i32_0 = arith.constant 0 : i32
    %c0_i32_1 = arith.constant 0 : i32
    return %c0_i32, %c0_i32_0 : i32, i32
  }
  func.func @transform_3(%arg0: i32) -> (i32, i32, i32) {
    %c0_i32 = arith.constant 0 : i32
    %c0_i32_0 = arith.constant 0 : i32
    %c0_i32_1 = arith.constant 0 : i32
    %c0_i32_2 = arith.constant 0 : i32
    return %c0_i32, %c0_i32_0, %c0_i32_1 : i32, i32, i32
  }
  func.func @transform_4(%arg0: i32) -> (i32, i32) {
    %c0_i32 = arith.constant 0 : i32
    %c0_i32_0 = arith.constant 0 : i32
    %c0_i32_1 = arith.constant 0 : i32
    return %c0_i32, %c0_i32_0 : i32, i32
  }
  func.func @transform_5(%arg0: i32) -> (i32, i32) {
    %c0_i32 = arith.constant 0 : i32
    %c0_i32_0 = arith.constant 0 : i32
    %c0_i32_1 = arith.constant 0 : i32
    return %c0_i32, %c0_i32_0 : i32, i32
  }
  func.func @transform_6(%arg0: i32) -> (i32, i32) {
    %c0_i32 = arith.constant 0 : i32
    %c0_i32_0 = arith.constant 0 : i32
    %c0_i32_1 = arith.constant 0 : i32
    return %c0_i32, %c0_i32_0 : i32, i32
  }
  func.func @transform_7(%arg0: i32) -> (i32, i32) {
    %c0_i32 = arith.constant 0 : i32
    %c0_i32_0 = arith.constant 0 : i32
    return %arg0, %c0_i32 : i32, i32
  }
}

</mosaic_0001>

<bundles_post_ra>
// kernel: tpu_custom_call.1
= control target key start
LH: loop header
LB: loop body
LE: loop exit
PB: predicated region body
PF: predicated region fallthrough
CT: control target
= control target key end

     0   :  { %12 = vsyncpa [#allocation3], 0  ;;  %s1473_s0 = inlined_call_operand.vmem [shape: bf16[32,64], index: 0, kind: input, shape index: {}]   ;;  %s1474_s1 = inlined_call_operand.hbm [shape: bf16[3,64,128], index: 1, kind: input, shape index: {}]   ;;  %s1475_s2 = inlined_call_operand.vmem [shape: f32[1,128], index: 2, kind: input, shape index: {}]   ;;  %s1476_s3 = inlined_call_operand.hbm [shape: bf16[3,128,128], index: 3, kind: input, shape index: {}]   ;;  %s1477_s4 = inlined_call_operand.vmem [shape: f32[1,128], index: 4, kind: input, shape index: {}]   ;;  %s1478_s5 = inlined_call_operand.vmem [shape: f32[16,1], index: 5, kind: input, shape index: {}]   ;;  %s1479_s6 = inlined_call_operand.vmem [shape: f32[16,1], index: 6, kind: input, shape index: {}]   ;;  %s1480_s7 = inlined_call_operand.hbm [shape: f32[32,128], index: 7, kind: output, shape index: {}]  }
   0x1   :  { %13 = vsyncpa [#allocation6], 0 }
   0x2   :  { %14 = vsyncpa [#allocation4], 0 }
   0x3   :  { %16 = vsyncpa [#allocation4 + $0x1], 0  ;;  %s1334_s24 = smov 0   ;;  %s1336_s25 = smov 0  }
   0x4   :  { %s1338_s26 = smov 0   ;;  %s1340_s27 = smov 0  }
   0x5 LB: > { %s1355_s28 = sadd.s32 4294967295, %s1285_s27   ;;  %s881_s29 = sadd.s32 4294967294, %s1285_s27   ;;  %s1285_s27 = sphi %s1340_s27, %s1487_s27   ;;  %s1281_s26 = sphi %s1338_s26, %s1486_s26   ;;  %s1277_s25 = sphi %s1336_s25, %s1485_s25   ;;  %s1273_s24 = sphi %s1334_s24, %s1484_s24  }
   0x6   : > { %s1359_s30 = sadd.s32 1, %s1285_s27   ;;  %s181_s8 = sadd.s32 1, %s1281_s26 }
   0x7   : > { %s178_s9 = ssub.s32 %s1285_s27, %s1359_s30  ;;  %p191_p0 = scmp.ne.s32.totalorder %s1281_s26, %s1277_s25 }
   0x8   : > { %p179_p1 = scmp.eq.s32.totalorder %s178_s9, 0  ;;  %p192_p2 = scmp.eq.s32.totalorder %s1355_s28, 1 }
   0x9   : > { %p197_p3 = scmp.ne.s32.totalorder %s1277_s25, %s1273_s24  ;;  %p198_p4 = scmp.eq.s32.totalorder %s881_s29, 1 }
   0xa   : > { %s1370_s10 = scalar_select %p179_p1, %s1281_s26, %s181_s8  }
   0xb   : > { %p1372_p5 = por %p192_p2, %p191_p0  ;;  %p1376_p6 = por %p198_p4, %p197_p3 }
   0xc   : > { %p882_p7 = scmp.ge.s32.totalorder %s1285_s27, 1  ;;  %p205_p8 = scmp.lt.s32.totalorder %s1285_s27, 3 }
   0xd   : > { %p1107_p9 = scmp.eq.s32.totalorder %s1355_s28, 0  ;;  %s216_s16 = sshll.u32 %s1474_s1, 4  ;;  %s217_s16 = int_to_ptr.hbm [resolvable:$true] %s216_s16 }
   0xe   : > { %p1383_p10 = pnand %p882_p7, %p205_p8  ;;  %s1287_s17 = smov [#allocation2]  }
   0xf   : > { %s218_s18 = sshll.u32 %s1287_s17, 4  ;;  %s233_s21 = sshll.u32 %s1476_s3, 4  ;;  %s219_s18 = int_to_ptr.vmem [resolvable:$true] %s218_s18  ;;  %s234_s21 = int_to_ptr.hbm [resolvable:$true] %s233_s21 }
  0x10   : > { %p1096_p11 = pneg %p1383_p10  ;;  %s1288_s22 = smov 64  }
  0x11   : > { %s1289_s23 = smov 4   ;;  %s1290_s29 = smov [#allocation5]  }
  0x12   : > { %p1097_p12 = pnand %p1107_p9, %p1096_p11  ;;  %s235_s8 = sshll.u32 %s1290_s29, 4  ;;  %s236_s8 = int_to_ptr.vmem [resolvable:$true] %s235_s8 }
  0x13   : > { %269 = sbr.rel (%p1383_p10) target bundleno = 369 (0x171), region = 48 }
  0x14   : > { %1099 = dma.hbm_to_vmem [thread:$0]  (!%p1097_p12), %s217_s16, 1536, %s219_s18, [#allocation3], %s1288_s22, %s1288_s22, %s1289_s23  }
  0x15   : > { %1102 = dma.hbm_to_vmem [thread:$0]  (!%p1097_p12), %s234_s21, 3072, %s236_s8, [#allocation6], %s1288_s22, %s1288_s22, %s1289_s23  }
  0x18   : > { %1260 = dma.done.wait (%p1107_p9), [#allocation3], 1536  }
  0x19   : > { %1262 = vsyncadd (%p1107_p9), [#allocation3], 4294965760 }
  0x1a   : > { %1264 = dma.done.wait (%p1107_p9), [#allocation6], 3072  }
  0x1b   : > { %1266 = vsyncadd (%p1107_p9), [#allocation6], 4294964224  ;;  %s890_s9 = sshll.u32 %s1355_s28, 1  ;;  %v1052_v0 = vld [vmem:[#allocation2 + $0x18] sm:$0xff]  ;;  %v1051_v2 = vld [vmem:[#allocation2 + $0x10] sm:$0xff]  ;;  %v1291_v3 = vmov 0   ;;  %v476_v44 = vlaneseq }
  0x1c   : > { %p308_p13 = scmp.lt.s32.totalorder %s890_s9, 3  ;;  %v1060_v1 = vld [vmem:[#allocation2 + $0x58] sm:$0xff]  ;;  %366 = vmatpush.bf16.msra.mxu2 %v1052_v0  ;;  %1151 = vset.pattern.permute.xlu0 %v1291_v3  ;;  %v1059_v4 = vld [vmem:[#allocation2 + $0x50] sm:$0xff]  ;;  %v315_v5 = vld [vmem:[%s1478_s5] sm:$0xff]  ;;  %vm358_vm0 = vcmask 523264   ;;  %s304_s15 = sand.u32 1, %s1277_s25  }
  0x1d   : > { %422 = vmatpush.bf16.msra.mxu1 %v1060_v1  ;;  %1152 = vset.pattern.permute.xlu1 %v1291_v3  ;;  %v317_v6 = vld [vmem:[%s1479_s6] sm:$0xff]  ;;  %v1050_v7 = vld [vmem:[#allocation2 + $0x8] sm:$0xff]  ;;  %v1056_v12 = vld [vmem:[#allocation2 + $0x38] sm:$0xff]  ;;  %v477_v46 = vshrl.u32 %v476_v44, 7  ;;  %s889_s16 = sshll.u32 %s304_s15, 4  ;;  %s1235_s14 = scalar_lea.hbm %s1480_s7, 32 }
  0x1e   : > { %s1489_s9 = smov (!%p308_p13, %s890_s9), 3  ;;  %483 = vperm.xlu0 %1151, %v315_v5   ;;  %502 = vperm.xlu1 %1152, %v317_v6   ;;  %v1058_v8 = vld [vmem:[#allocation2 + $0x48] sm:$0xff]  ;;  %v1049_v9 = vld [vmem:[#allocation2] sm:$0xff]  ;;  %v1055_v15 = vld [vmem:[#allocation2 + $0x30] sm:$0xff]  ;;  %s306_s21 = scalar_lea.vmem [#allocation7], %s889_s16 }
  0x1f   : > { %s891_s17 = sshll.u32 %s1489_s9, 2  ;;  %v316_v10 = vld [vmem:[%s1478_s5 + $0x8] sm:$0xff]  ;;  %v1057_v13 = vld [vmem:[#allocation2 + $0x40] sm:$0xff]  ;;  %v1068_v18 = vld [vmem:[#allocation5 + $0x38] sm:$0xff]  ;;  %vm478_vm1 = vcmp.lt.s32.totalorder %v477_v46, 1  ;;  %vm497_vm2 = vcmp.lt.s32.totalorder %v477_v46, 7 }
  0x20   : > { %367 = vmatpush.bf16.msra.mxu2 %v1051_v2  ;;  %s311_s20 = scalar_lea.vmem %s1473_s0, %s891_s17  ;;  %v318_v11 = vld [vmem:[%s1479_s6 + $0x8] sm:$0xff]  ;;  %v1053_v17 = vld [vmem:[#allocation2 + $0x20] sm:$0xff]  ;;  %v1084_v19 = vld [vmem:[#allocation5 + $0xb8] sm:$0xff]  ;;  %583 = vmatpush.bf16.msra.mxu3 %v1068_v18  ;;  %s1085_s17 = sshll.u32 %s1355_s28, 4 }
  0x21   : > { %423 = vmatpush.bf16.msra.mxu1 %v1059_v4  ;;  %v1048_v14 = vld [vmem:[%s311_s20] sm:$0xff]  ;;  %v1054_v16 = vld [vmem:[#allocation2 + $0x28] sm:$0xff]  ;;  %v1076_v20 = vld [vmem:[#allocation5 + $0x78] sm:$0xff]  ;;  %679 = vmatpush.bf16.msra.mxu0 %v1084_v19  ;;  %s793_s20 = scalar_lea.hbm %s1480_s7, %s1085_s17  ;;  %s794_s22 = sshll.u32 %s306_s21, 4  ;;  %s795_s22 = int_to_ptr.vmem [resolvable:$true] %s794_s22 }
  0x22   : > { %v1067_v21 = vld [vmem:[#allocation5 + $0x30] sm:$0xff]  ;;  %v1066_v24 = vld [vmem:[#allocation5 + $0x28] sm:$0xff]  ;;  %v1065_v27 = vld [vmem:[#allocation5 + $0x20] sm:$0xff]  ;;  %s796_s23 = sshll.u32 %s793_s20, 4  ;;  %s782_s28 = scalar_lea.sflag [#allocation4], %s304_s15  ;;  %s797_s23 = int_to_ptr.hbm [resolvable:$true] %s796_s23 }
  0x23   : > { %v1083_v22 = vld [vmem:[#allocation5 + $0xb0] sm:$0xff]  ;;  %v1082_v25 = vld [vmem:[#allocation5 + $0xa8] sm:$0xff]  ;;  %v1081_v28 = vld [vmem:[#allocation5 + $0xa0] sm:$0xff]  ;;  %s1229_s29 = sshra.s32 %s797_s23, 4  ;;  %s1230_s29 = int_to_ptr.hbm [resolvable:$true] %s1229_s29 }
  0x24   : > { %368 = vmatpush.bf16.msra.mxu2 %v1050_v7  ;;  %v1075_v23 = vld [vmem:[#allocation5 + $0x70] sm:$0xff]  ;;  %584 = vmatpush.bf16.msra.mxu3 %v1067_v21  ;;  %v1074_v26 = vld [vmem:[#allocation5 + $0x68] sm:$0xff]  ;;  %v1073_v29 = vld [vmem:[#allocation5 + $0x60] sm:$0xff]  ;;  %s1231_s8 = scalar_lea.hbm %s1230_s29, 16  ;;  %p1236_p3 = scmp.lt.s32.totalorder %s1230_s29, %s1480_s7 }
  0x25   : > { %424 = vmatpush.bf16.msra.mxu1 %v1058_v8  ;;  %680 = vmatpush.bf16.msra.mxu0 %v1083_v22  ;;  %v1064_v30 = vld [vmem:[#allocation5 + $0x18] sm:$0xff]  ;;  %v1063_v33 = vld [vmem:[#allocation5 + $0x10] sm:$0xff]  ;;  %v1062_v36 = vld [vmem:[#allocation5 + $0x8] sm:$0xff]  ;;  %p1232_p0 = scmp.ne.s32.totalorder %s1230_s29, %s1231_s8  ;;  %p1237_p4 = scmp.lt.s32.totalorder %s1235_s14, %s1231_s8 }
  0x26   : > { %488 = vperm.xlu0 %1151, %v316_v10   ;;  %507 = vperm.xlu1 %1152, %v318_v11   ;;  %v1080_v31 = vld [vmem:[#allocation5 + $0x98] sm:$0xff]  ;;  %v1079_v34 = vld [vmem:[#allocation5 + $0x90] sm:$0xff]  ;;  %v1078_v37 = vld [vmem:[#allocation5 + $0x88] sm:$0xff] }
  0x27   : > { %v1072_v32 = vld [vmem:[#allocation5 + $0x58] sm:$0xff]  ;;  %v1071_v35 = vld [vmem:[#allocation5 + $0x50] sm:$0xff]  ;;  %v1070_v38 = vld [vmem:[#allocation5 + $0x48] sm:$0xff]  ;;  %p1233_p1 = pnand %p1232_p0, %p1372_p5  ;;  %p1238_p7 = por %p1237_p4, %p1236_p3 }
  0x28   : > { %369 = vmatpush.bf16.msra.mxu2 %v1049_v9  ;;  %585 = vmatpush.bf16.msra.mxu3 %v1066_v24  ;;  %v1061_v39 = vld [vmem:[#allocation5] sm:$0xff] }
  0x29   : > { %425 = vmatpush.bf16.msra.mxu1 %v1057_v13  ;;  %681 = vmatpush.bf16.msra.mxu0 %v1082_v25  ;;  %v1077_v40 = vld [vmem:[#allocation5 + $0x80] sm:$0xff]  ;;  %p1234_p2 = pneg %p1233_p1 }
  0x2a   : > { %v1069_v41 = vld [vmem:[#allocation5 + $0x40] sm:$0xff] }
  0x2b   : > { %912 = vmatmul.msk.bf16.vlgmr.msra.gmra.mxu2 %vm358_vm0, %v1048_v14  ;;  %v1153_v50 = vld [vmem:[%s1475_s2] ss:$0 sm:$0xff]  ;;  %p1239_p8 = pnand %p1238_p7, %p1234_p2 }
  0x2c   : > { %464 = vmatpush.bf16.msrb.mxu2 %v1056_v12  ;;  %929 = vmatmul.msk.bf16.vlgmr.msra.gmra.mxu1 %vm358_vm0, %v1048_v14  ;;  %v1154_v19 = vld [vmem:[%s1477_s4] ss:$0 sm:$0xff] }
  0x2d   : > { %745 = vmatpush.bf16.msrb.mxu1 %v1076_v20  ;;  %586 = vmatpush.bf16.msra.mxu3 %v1065_v27 }
  0x2e   : > { %682 = vmatpush.bf16.msra.mxu0 %v1081_v28 }
  0x30   : > { %465 = vmatpush.bf16.msrb.mxu2 %v1055_v15 }
  0x31   : > { %746 = vmatpush.bf16.msrb.mxu1 %v1075_v23  ;;  %587 = vmatpush.bf16.msra.mxu3 %v1064_v30 }
  0x32   : > { %683 = vmatpush.bf16.msra.mxu0 %v1080_v31 }
  0x34   : > { %466 = vmatpush.bf16.msrb.mxu2 %v1054_v16 }
  0x35   : > { %747 = vmatpush.bf16.msrb.mxu1 %v1074_v26  ;;  %588 = vmatpush.bf16.msra.mxu3 %v1063_v33 }
  0x36   : > { %684 = vmatpush.bf16.msra.mxu0 %v1079_v34 }
  0x38   : > { %467 = vmatpush.bf16.msrb.mxu2 %v1053_v17 }
  0x39   : > { %748 = vmatpush.bf16.msrb.mxu1 %v1073_v29  ;;  %589 = vmatpush.bf16.msra.mxu3 %v1062_v36 }
  0x3a   : > { %685 = vmatpush.bf16.msra.mxu0 %v1078_v37 }
  0x3b   : > { %946 = vmatmul.msk.bf16.vlgmr.msrb.gmra.mxu2 %vm358_vm0, %v1048_v14 }
  0x3d   : > { %749 = vmatpush.bf16.msrb.mxu1 %v1072_v32  ;;  %590 = vmatpush.bf16.msra.mxu3 %v1061_v39 }
  0x3e   : > { %686 = vmatpush.bf16.msra.mxu0 %v1077_v40 }
  0x41   : > { %750 = vmatpush.bf16.msrb.mxu1 %v1071_v35 }
  0x45   : > { %751 = vmatpush.bf16.msrb.mxu1 %v1070_v38 }
  0x49   : > { %752 = vmatpush.bf16.msrb.mxu1 %v1069_v41 }
  0x90   : > { %v484_v48 = vpop.permute.xlu0 %483  ;;  %v503_v53 = vpop.permute.xlu1 %502 }
  0x98   : > { %v489_v63 = vpop.permute.xlu0 %488  ;;  %v508_v1 = vpop.permute.xlu1 %507 }
  0xa9   : > { %v427_v43 = vpop.f32.mrf.mxu1 }
  0xaa   : > { %v495_v52 = vrot.slane %v427_v43, 1 }
  0xae   : > { %v371_v42 = vpop.f32.mrf.mxu2 }
  0xaf   : > { %v474_v51 = vrot.slane %v371_v42, 7 }
  0xb1   : > { %v429_v47 = vpop.f32.mrf.mxu1 }
  0xb2   : > { %v496_v54 = vrot.slane %v429_v47, 1 }
  0xb4   : > { %v498_v58 = vsel %vm497_vm2, %v495_v52, %v496_v54  ;;  %v499_v0 = vsel %vm497_vm2, %v496_v54, %v495_v52 }
  0xb5   : > { %v510_v60 = vmul.f32 %v503_v53, %v498_v58  ;;  %v511_v6 = vmul.f32 %v508_v1, %v499_v0 }
  0xb6   : > { %v373_v45 = vpop.f32.mrf.mxu2 }
  0xb7   : > { %v475_v49 = vrot.slane %v373_v45, 7 }
  0xb9   : > { %v480_v55 = vsel %vm478_vm1, %v475_v49, %v474_v51  ;;  %v479_v62 = vsel %vm478_vm1, %v474_v51, %v475_v49 }
  0xba   : > { %v491_v59 = vmul.f32 %v484_v48, %v480_v55  ;;  %v492_v3 = vmul.f32 %v489_v63, %v479_v62 }
  0xbe   : > { %v469_v56 = vpop.f32.mrf.mxu2 }
  0xbf   : > { %v470_v57 = vadd.f32 %v1153_v50, %v469_v56 }
  0xc1   : > { %v493_v61 = vadd.f32 %v491_v59, %v470_v57 }
  0xc3   : > { %v512_v4 = vadd.f32 %v510_v60, %v493_v61 }
  0xc5   : > { %v514_v8 = vmul.f32 0.2, %v512_v4 }
  0xc6   : > { %v471_v2 = vpop.f32.mrf.mxu2 }
  0xc7   : > { %v472_v5 = vadd.f32 %v1153_v50, %v471_v2  ;;  %v516_v11 = vmax.f32 %v512_v4, %v514_v8 }
  0xc9   : > { %v494_v7 = vadd.f32 %v492_v3, %v472_v5 }
  0xcb   : > { %v513_v9 = vadd.f32 %v511_v6, %v494_v7 }
  0xcd   : > { %v515_v10 = vmul.f32 0.2, %v513_v9 }
  0xcf   : > { %v517_v12 = vmax.f32 %v513_v9, %v515_v10 }
  0xd1   : > { %v518_v13 = vpack.c.bf16 %v517_v12, %v516_v11 }
  0xd3   : > { %591 = vmatmul.bf16.vlgmr.msra.gmra.mxu3 %v518_v13  ;;  %687 = vmatmul.bf16.vlgmr.msra.gmra.mxu0 %v518_v13 }
  0xd4   : > { %753 = vmatmul.bf16.vlgmr.msrb.gmra.mxu1 %v518_v13 }
 0x150   : > { %v688_v14 = vpop.f32.mrf.mxu0 }
 0x151   : > { %v754_v15 = vpop.f32.mrf.mxu1  ;;  %v767_v21 = vrot.slane %v688_v14, 1 }
 0x152   : > { %v755_v29 = vadd.f32 %v1154_v19, %v754_v15 }
 0x156   : > { %v592_v16 = vpop.f32.mrf.mxu3 }
 0x157   : > { %v759_v22 = vrot.slane %v592_v16, 7 }
 0x158   : > { %v690_v17 = vpop.f32.mrf.mxu0 }
 0x159   : > { %v768_v18 = vrot.slane %v690_v17, 1  ;;  %v756_v23 = vpop.f32.mrf.mxu1 }
 0x15a   : > { %v757_v30 = vadd.f32 %v1154_v19, %v756_v23 }
 0x15b   : > { %v769_v25 = vsel %vm497_vm2, %v767_v21, %v768_v18  ;;  %v770_v26 = vsel %vm497_vm2, %v768_v18, %v767_v21 }
 0x15c   : > { %v771_v33 = vmul.f32 %v769_v25, %v503_v53  ;;  %v772_v34 = vmul.f32 %v770_v26, %v508_v1 }
 0x15e   : > { %v594_v20 = vpop.f32.mrf.mxu3 }
 0x15f   : > { %v760_v24 = vrot.slane %v594_v20, 7 }
 0x161   : > { %v761_v27 = vsel %vm478_vm1, %v759_v22, %v760_v24  ;;  %v762_v28 = vsel %vm478_vm1, %v760_v24, %v759_v22 }
 0x162   : > { %v763_v31 = vmul.f32 %v762_v28, %v484_v48  ;;  %v764_v32 = vmul.f32 %v761_v27, %v489_v63 }
 0x164   : > { %v765_v35 = vadd.f32 %v763_v31, %v755_v29  ;;  %v766_v36 = vadd.f32 %v764_v32, %v757_v30 }
 0x166   : > { %v773_v37 = vadd.f32 %v771_v33, %v765_v35  ;;  %v774_v38 = vadd.f32 %v772_v34, %v766_v36 }
 0x168   : > { %v775_v39 = vmul.f32 0.2, %v773_v37  ;;  %v776_v40 = vmul.f32 0.2, %v774_v38 }
 0x16a   : > { %v777_v41 = vmax.f32 %v773_v37, %v775_v39  ;;  %v778_v42 = vmax.f32 %v774_v38, %v776_v40 }
 0x16c   : > { %779 = vst [vmem:[%s306_s21] sm:$0xff] %v777_v41 }
 0x16d   : > { %780 = vst [vmem:[%s306_s21 + $0x8] sm:$0xff] %v778_v42 }
 0x16e   : > { %1242 = shalt.err (!%p1239_p8)
}
 0x16f   : > { %s1292_s15 = smov 128   ;;  %s1293_s18 = smov 8  }
 0x170   : > { %1094 = dma.vmem_to_hbm [thread:$0]  (%p1372_p5), %s795_s22, 256, %s797_s23, %s782_s28, %s1292_s15, %s1292_s15, %s1293_s18  }
 0x171 PF: > { %p1111_p9 = scmp.ge.s32.totalorder %s1285_s27, 2  ;;  %s811_s19 = sand.u32 1, %s1273_s24  }
 0x172   : > { %s812_s20 = scalar_lea.sflag [#allocation4], %s811_s19 }
 0x173   : > { %p1104_p10 = pnand %p1111_p9, %p1376_p6 }
 0x175   : > { %p1105_p11 = pneg %p1104_p10 }
 0x177   : > { %1268 = dma.done.wait (%p1105_p11), %s812_s20, 256  }
 0x178   : > { %1270 = vsyncadd (%p1105_p11), %s812_s20, 4294967040  ;;  %p19_p12 = scmp.ge.s32.totalorder %s1359_s30, 4   ;;  %s1484_s24 = smov %s1277_s25 }
 0x179   : > { %s1485_s25 = smov %s1281_s26  ;;  %s1486_s26 = smov %s1370_s10 }
 0x17a   : > { %s1487_s27 = smov %s1359_s30  ;;  %21 = sbr.rel (!%p19_p12) target bundleno = 5 (0x5), region = 96 }
 0x17f   :  { %818 = vsyncpa [#allocation3], 1 }
 0x180   :  { %820 = vsyncpa [#allocation3 + $0x1], 1 }
 0x181   :  { %821 = vsyncpa [#allocation6], 1 }
 0x182   :  { %822 = vsyncpa [#allocation4], 1 }
 0x183   :  { %824 = vsyncpa [#allocation4 + $0x1], 1 }

</bundles_post_ra>
